<compile_context>
chip_gen: v5e
topology: v5e:2x2
jax: 0.10.0
libtpu: 0.0.40
codegen_flags: <defaults>
</compile_context>

<pallas_src>
import jax
import jax.numpy as jnp
from jax.experimental import pallas as pl
from jax.experimental.pallas import tpu as pltpu


def decoder_kernel(x_ref, w_ref, b_ref, o_ref):
    # x_ref: (TR, K) f32   (K = fold*latent_dim, 128 when folding applies)
    # w_ref: (K, N) bf16   block-diagonal W^T, resident
    # b_ref: (1, N) f32    tiled bias, resident
    # o_ref: (TR, N)
    h = jnp.maximum(x_ref[...], 0.0)                     # ReLU on the VPU
    y = jnp.dot(h.astype(jnp.bfloat16), w_ref[...],      # single-pass bf16 MXU
                preferred_element_type=jnp.float32)
    o_ref[...] = (y + b_ref[...]).astype(o_ref.dtype)


def _round_up(x, m):
    return ((x + m - 1) // m) * m


def decoder_forward(x, weight, bias, *, block_rows=16384):
    """ReLU(x) @ weight.T + bias.  x: (B, D), weight: (OUT, D), bias: (OUT,)."""
    B, D = x.shape
    OUT = weight.shape[0]

    # ---- one-time layout prep (cheap XLA ops outside the kernel) -----------
    # Fold `fold` consecutive batch rows into one 128-lane row so the MXU sees
    # a dense (.,128)x(128, fold*OUT) contraction instead of a skinny K=D one.
    fold = (128 // D) if (D <= 128 and 128 % D == 0) else 1

    b_pad = _round_up(B, fold)
    if b_pad != B:
        x = jnp.pad(x, ((0, b_pad - B), (0, 0)))          # zero rows, sliced off below
    R = b_pad // fold                                     # folded row count
    K = fold * D                                          # contraction width
    N = fold * OUT                                        # folded output lanes

    x_f = x.reshape(R, K)                                 # free: rows contiguous in HBM
    w_bd = jnp.kron(jnp.eye(fold, dtype=weight.dtype), weight.T)   # (K, N) block-diag
    w_bd = w_bd.astype(jnp.bfloat16)                      # single-pass MXU operand
    bias_f = jnp.tile(bias, fold).reshape(1, N).astype(jnp.float32)

    # ---- batch tiling -------------------------------------------------------
    # Folded-row tile cap; multiple of 8 (sublane) by construction.
    max_tr = max(8, (max(block_rows // fold, 8) // 8) * 8)
    if R <= 8:
        tr = R                                            # single full-array block (legal)
    elif R <= max_tr:
        # Fits in one tile: split in two so the 'parallel' axis can shard
        # across both TensorCores on v7x (no-op on v5e/v6e).
        tr = max(8, _round_up(pl.cdiv(R, 2), 8))
    else:
        tr = max_tr
    grid = (pl.cdiv(R, tr),)

    # Double-buffered VMEM footprint (40-lane out block pads to 128 lanes):
    #   x: tr*128*4*2 + out: tr*128*4*2 ~= 8 MiB at tr=4096  -> fits all gens.
    cost = pl.CostEstimate(
        flops=2 * B * D * OUT,
        transcendentals=0,
        bytes_accessed=4 * (B * D + B * OUT) + 2 * K * N + 4 * N,
    )

    out_f = pl.pallas_call(
        decoder_kernel,
        out_shape=jax.ShapeDtypeStruct((R, N), x.dtype),
        grid_spec=pl.GridSpec(
            grid=grid,
            in_specs=[
                pl.BlockSpec((tr, K), lambda i: (i, 0)),   # x: streamed over batch
                pl.BlockSpec((K, N), lambda i: (0, 0)),    # W_bd: resident
                pl.BlockSpec((1, N), lambda i: (0, 0)),    # bias: resident
            ],
            out_specs=pl.BlockSpec((tr, N), lambda i: (i, 0)),
        ),
        compiler_params=pltpu.CompilerParams(
            dimension_semantics=("parallel",),             # megacore sharding on v7x
            vmem_limit_bytes=32 * 1024 * 1024,
        ),
        cost_estimate=cost,
    )(x_f, w_bd, bias_f)

    out = out_f.reshape(b_pad, OUT)
    return out[:B] if b_pad != B else out


if __name__ == "__main__":
    key = jax.random.PRNGKey(0)
    k_x, k_w, k_b = jax.random.split(key, 3)

    batch = 8
    latent_dim = 32
    out_dim = 10

    # Deterministic parameter init (mimics nn.Linear default scale 1/sqrt(fan_in))
    scale = 1.0 / jnp.sqrt(jnp.float32(latent_dim))
    weight = jax.random.uniform(
        k_w, (out_dim, latent_dim), jnp.float32, minval=-scale, maxval=scale
    )
    bias = jax.random.uniform(
        k_b, (out_dim,), jnp.float32, minval=-scale, maxval=scale
    )

    x = jax.random.normal(k_x, (batch, latent_dim), jnp.float32)

    out = decoder_forward(x, weight, bias)
    out = jax.block_until_ready(out)

    # Reference in plain JAX (f32). Kernel uses bf16 MXU operands with f32
    # accumulation, so the tolerance is consciously relaxed vs. the old 1e-5.
    ref = jnp.maximum(x, 0.0) @ weight.T + bias
    assert out.shape == (batch, out_dim)
    assert jnp.allclose(out, ref, atol=5e-2, rtol=5e-2), float(
        jnp.max(jnp.abs(out - ref))
    )

    print("KERNEL_OK")
</pallas_src>

<mosaic_0001>
module attributes {stable_mosaic.version = 11 : i64} {
  func.func @decoder_kernel(%arg0: i32, %arg1: memref<2x128xf32, #tpu.memory_space<vmem>>, %arg2: memref<128x40xbf16, #tpu.memory_space<vmem>>, %arg3: memref<1x40xf32, #tpu.memory_space<vmem>>, %arg4: memref<2x40xf32, #tpu.memory_space<vmem>>) attributes {dimension_semantics = [#tpu.dimension_semantics<parallel>], iteration_bounds = array<i64: 1>, scalar_prefetch = 0 : i64, scratch_operands = 0 : i64, tpu.core_type = #tpu.core_type<tc>, window_params = [{transform_indices = @transform_0, window_bounds = array<i64: 2, 128>}, {pipeline_mode = #tpu.pipeline_mode<synchronous>, transform_indices = @transform_1, window_bounds = array<i64: 128, 40>}, {pipeline_mode = #tpu.pipeline_mode<synchronous>, transform_indices = @transform_2, window_bounds = array<i64: 1, 40>}, {transform_indices = @transform_3, window_bounds = array<i64: 2, 40>}]} {
    %c0 = arith.constant 0 : index
    %c0_0 = arith.constant 0 : index
    %0 = vector.load %arg1[%c0, %c0_0] : memref<2x128xf32, #tpu.memory_space<vmem>>, vector<2x128xf32>
    %cst = arith.constant 0.000000e+00 : f32
    %1 = vector.broadcast %cst : f32 to vector<2x128xf32>
    %2 = arith.maximumf %0, %1 : vector<2x128xf32>
    %3 = arith.truncf %2 : vector<2x128xf32> to vector<2x128xbf16>
    %c0_1 = arith.constant 0 : index
    %c0_2 = arith.constant 0 : index
    %4 = vector.load %arg2[%c0_1, %c0_2] : memref<128x40xbf16, #tpu.memory_space<vmem>>, vector<128x40xbf16>
    %cst_3 = arith.constant dense<0.000000e+00> : vector<2x40xf32>
    %5 = tpu.matmul %3, %4, %cst_3 {dimension_numbers = #tpu.dot_dimension_numbers<[1], [0], [0], [1], [0, 0, 1, 1], [], []>} : vector<2x128xbf16>, vector<128x40xbf16>, vector<2x40xf32> -> vector<2x40xf32>
    %c0_4 = arith.constant 0 : index
    %c0_5 = arith.constant 0 : index
    %6 = vector.load %arg3[%c0_4, %c0_5] : memref<1x40xf32, #tpu.memory_space<vmem>>, vector<1x40xf32>
    %7 = vector.broadcast %6 : vector<1x40xf32> to vector<2x40xf32>
    %8 = arith.addf %5, %7 : vector<2x40xf32>
    %c0_6 = arith.constant 0 : index
    %c0_7 = arith.constant 0 : index
    %9 = vector.load %arg4[%c0_6, %c0_7] : memref<2x40xf32, #tpu.memory_space<vmem>>, vector<2x40xf32>
    tpu.vector_store %arg4[%c0_6, %c0_7], %8 {strides = array<i32>} : memref<2x40xf32, #tpu.memory_space<vmem>>, vector<2x40xf32>,
    return
  }
  func.func @transform_0(%arg0: i32) -> (i32, i32) {
    %c0_i32 = arith.constant 0 : i32
    %c0_i32_0 = arith.constant 0 : i32
    return %arg0, %c0_i32 : i32, i32
  }
  func.func @transform_1(%arg0: i32) -> (i32, i32) {
    %c0_i32 = arith.constant 0 : i32
    %c0_i32_0 = arith.constant 0 : i32
    %c0_i32_1 = arith.constant 0 : i32
    return %c0_i32, %c0_i32_0 : i32, i32
  }
  func.func @transform_2(%arg0: i32) -> (i32, i32) {
    %c0_i32 = arith.constant 0 : i32
    %c0_i32_0 = arith.constant 0 : i32
    %c0_i32_1 = arith.constant 0 : i32
    return %c0_i32, %c0_i32_0 : i32, i32
  }
  func.func @transform_3(%arg0: i32) -> (i32, i32) {
    %c0_i32 = arith.constant 0 : i32
    %c0_i32_0 = arith.constant 0 : i32
    return %arg0, %c0_i32 : i32, i32
  }
}

</mosaic_0001>

<bundles_post_ra>
// kernel: tpu_custom_call.1
= control target key start
LH: loop header
LB: loop body
LE: loop exit
PB: predicated region body
PF: predicated region fallthrough
CT: control target
= control target key end

     0   :  { %s239_s0 = inlined_call_operand.vmem [shape: f32[2,128], index: 0, kind: input, shape index: {}]   ;;  %s240_s1 = inlined_call_operand.vmem [shape: bf16[128,40], index: 1, kind: input, shape index: {}]   ;;  %s241_s2 = inlined_call_operand.vmem [shape: f32[1,40], index: 2, kind: input, shape index: {}]   ;;  %s242_s3 = inlined_call_operand.hbm [shape: f32[2,40], index: 3, kind: output, shape index: {}]  }
   0x1   :  { %v156_v0 = vld [vmem:[%s240_s1 + $0x38] sm:$0xff]  ;;  %v155_v1 = vld [vmem:[%s240_s1 + $0x30] sm:$0xff] }
   0x2   :  { %86 = vmatpush.bf16.msra.mxu0 %v156_v0 }
   0x3   :  { %8 = vsyncpa [#allocation3], 0  ;;  %v154_v2 = vld [vmem:[%s240_s1 + $0x28] sm:$0xff]  ;;  %v153_v3 = vld [vmem:[%s240_s1 + $0x20] sm:$0xff]  ;;  %s185_s5 = smov [#allocation2]   ;;  %s108_s9 = sshll.u32 %s242_s3, 4  ;;  %s109_s9 = int_to_ptr.hbm [resolvable:$true] %s108_s9 }
   0x4   :  { %v152_v4 = vld [vmem:[%s240_s1 + $0x18] sm:$0xff]  ;;  %v151_v5 = vld [vmem:[%s240_s1 + $0x10] sm:$0xff]  ;;  %v150_v6 = vld [vmem:[%s240_s1 + $0x8] sm:$0xff]  ;;  %s106_s6 = sshll.u32 %s185_s5, 4  ;;  %vm99_vm0 = vcmask 320512   ;;  %s107_s6 = int_to_ptr.vmem [resolvable:$true] %s106_s6 }
   0x5   :  { %v15_v7 = vld [vmem:[%s239_s0] sm:$0x3] }
   0x6   :  { %87 = vmatpush.bf16.msra.mxu0 %v155_v1  ;;  %v16_v8 = vmax.f32 %v15_v7, 0.0  ;;  %v149_v9 = vld [vmem:[%s240_s1] sm:$0xff] }
   0x7   :  { %v158_v11 = vld [vmem:[%s241_s2] ss:$0 sm:$0xff] }
   0x8   :  { %v17_v10 = vpack.c.bf16 %v16_v8, %v16_v8 }
   0xa   :  { %88 = vmatpush.bf16.msra.mxu0 %v154_v2 }
   0xe   :  { %89 = vmatpush.bf16.msra.mxu0 %v153_v3 }
  0x12   :  { %90 = vmatpush.bf16.msra.mxu0 %v152_v4 }
  0x16   :  { %91 = vmatpush.bf16.msra.mxu0 %v151_v5 }
  0x1a   :  { %92 = vmatpush.bf16.msra.mxu0 %v150_v6 }
  0x1e   :  { %93 = vmatpush.bf16.msra.mxu0 %v149_v9 }
  0x21   :  { %94 = vmatmul.bf16.vlgmr.msra.gmra.mxu0 %v17_v10 }
  0x9e   :  { %v95_v12 = vpop.f32.mrf.mxu0 }
  0x9f   :  { %v96_v13 = vadd.f32 %v158_v11, %v95_v12 }
  0xa1   :  { %100 = vst.msk [vmem:[#allocation2] sm:$0x3] %vm99_vm0, %v96_v13 }
  0xa2   :  { %111 = dma.vmem_to_hbm [thread:$0]  %s107_s6, 32, %s109_s9, [#allocation3]  }
  0xa6   :  { %v97_v14 = vpop.f32.mrf.mxu0 }
  0xa7   :  { %183 = dma.done.wait [#allocation3], 32  }
  0xa8   :  { %184 = vsyncadd [#allocation3], 4294967264 }
  0xa9   :  { %116 = vsyncpa [#allocation3], 1 }

</bundles_post_ra>
